<compile_context>
chip_gen: v7x
topology: tpu7x:2x2x1
jax: 0.10.0
libtpu: 0.0.40
codegen_flags: <defaults>
</compile_context>

<pallas_src>
import functools

import jax
import jax.numpy as jnp
import numpy as np
from jax.experimental import pallas as pl
from jax.experimental.pallas import tpu as pltpu

NUM_LAYERS = 3
KERNEL_SIZE = 2


def gwn_kernel(x_ref, adj_ref, gcn_w_ref, tcn_wt_ref, tcn_b_ref,
               out_wt_ref, out_b_ref, o_ref, *, num_layers):
    adj = adj_ref[...]                                     # (N, N)
    n = adj.shape[0]
    row = jax.lax.broadcasted_iota(jnp.int32, (n, 1), 0)   # node index per row
    bb = o_ref.shape[0]                                    # batches in this block
    for b in range(bb):                                    # small, static
        x = x_ref[b]                                       # (N, C)
        for i in range(num_layers):
            d = 2 ** i
            # --- GraphConvLayer: adj @ (x @ W) ---
            support = jnp.dot(x, gcn_w_ref[i],
                              preferred_element_type=jnp.float32)
            x = jnp.dot(adj, support, preferred_element_type=jnp.float32)
            # --- TemporalConvLayer (causal dilated Conv1d, kernel=2, dil=2^i)
            # x_shift[m] = x[m - d] for m >= d, else 0  ->  sublane roll + mask
            # (XLU/VPU slots; replaces the dense (N, N) shift matmul).
            x_shift = jnp.where(row >= d,
                                pltpu.roll(x, shift=d, axis=0),
                                0.0)
            # Fused taps: [x, x_shift] @ [W1^T ; W0^T] + bias   (one MXU dot)
            xx = jnp.concatenate([x, x_shift], axis=1)     # (N, 2C)
            y = (jnp.dot(xx, tcn_wt_ref[i],
                         preferred_element_type=jnp.float32)
                 + tcn_b_ref[i])
            # ReLU; nn.Dropout is identity at inference time.
            x = jnp.maximum(y, 0.0)
        # --- output Linear: x @ W_out^T + b_out ---
        out = (jnp.dot(x, out_wt_ref[...], preferred_element_type=jnp.float32)
               + out_b_ref[...])
        o_ref[b] = out.astype(o_ref.dtype)


def _default_batch_block(batch):
    """v7x has 2 TensorCores/chip: keep a parallel batch grid so both cores
    get work.  Single-TC chips (v5e/v6e): fold the whole batch into one
    invocation to avoid per-grid-step pipeline overhead (~0.35 us/step)."""
    try:
        kind = jax.devices()[0].device_kind.lower()
    except Exception:
        kind = ""
    if "7" in kind:
        return 1
    return batch


def graph_wavenet_forward(x, adj, gcn_w, tcn_w, tcn_b, out_w, out_b,
                          num_layers=NUM_LAYERS, batch_block=None):
    B, N, C = x.shape
    L = num_layers
    C_out = out_w.shape[0]

    if batch_block is None:
        batch_block = _default_batch_block(B)
    batch_block = max(1, min(int(batch_block), B))
    if B % batch_block != 0:
        batch_block = 1

    # Stack the two conv taps so the kernel does one dot per layer:
    #   [x, x_shift] @ [W1^T ; W0^T]  ==  x @ W1^T + x_shift @ W0^T
    tcn_w1t = jnp.transpose(tcn_w[:, :, :, 1], (0, 2, 1))   # (L, C_in, C_out)
    tcn_w0t = jnp.transpose(tcn_w[:, :, :, 0], (0, 2, 1))   # (L, C_in, C_out)
    tcn_wt = jnp.concatenate([tcn_w1t, tcn_w0t], axis=1)    # (L, 2*C_in, C_out)
    tcn_b3 = tcn_b.reshape(L, 1, C)                         # (L, 1, C)
    out_wt = out_w.T                                        # (C, C_out)
    out_b2 = out_b.reshape(1, C_out)                        # (1, C_out)

    kernel = functools.partial(gwn_kernel, num_layers=L)
    grid = (B // batch_block,)

    # TODO(synk): at realistic GraphWaveNet sizes (N in the hundreds+), tile
    # the N axis of adj @ support and cast weights/activations to bf16 for the
    # MXU; at N=16, C=4 everything fits trivially in VMEM.
    return pl.pallas_call(
        kernel,
        out_shape=jax.ShapeDtypeStruct((B, N, C_out), x.dtype),
        grid=grid,
        in_specs=[
            pl.BlockSpec((batch_block, N, C), lambda b: (b, 0, 0)),   # x
            pl.BlockSpec((N, N), lambda b: (0, 0)),                   # adj
            pl.BlockSpec((L, C, C), lambda b: (0, 0, 0)),             # gcn W
            pl.BlockSpec((L, 2 * C, C), lambda b: (0, 0, 0)),         # fused tcn W
            pl.BlockSpec((L, 1, C), lambda b: (0, 0, 0)),             # tcn bias
            pl.BlockSpec((C, C_out), lambda b: (0, 0)),               # out W^T
            pl.BlockSpec((1, C_out), lambda b: (0, 0)),               # out bias
        ],
        out_specs=pl.BlockSpec((batch_block, N, C_out), lambda b: (b, 0, 0)),
        compiler_params=pltpu.CompilerParams(
            dimension_semantics=("parallel",)),
    )(x, adj, gcn_w, tcn_wt, tcn_b3, out_wt, out_b2)


def reference_forward(x, adj, gcn_w, tcn_w, tcn_b, out_w, out_b,
                      num_layers=NUM_LAYERS):
    """Pure-JAX reference matching the PyTorch forward (eval mode)."""
    for i in range(num_layers):
        d = 2 ** i
        x = jnp.einsum('bnc,cd->bnd', x, gcn_w[i])
        x = jnp.einsum('nm,bmc->bnc', adj, x)
        cur = jnp.einsum('bnc,oc->bno', x, tcn_w[i, :, :, 1])
        x_shift = jnp.pad(x, ((0, 0), (d, 0), (0, 0)))[:, : x.shape[1], :]
        prev = jnp.einsum('bnc,oc->bno', x_shift, tcn_w[i, :, :, 0])
        x = cur + prev + tcn_b[i][None, None, :]
        x = jnp.maximum(x, 0.0)
    return jnp.einsum('bnc,oc->bno', x, out_w) + out_b[None, None, :]


if __name__ == "__main__":
    # Small shapes consistent with the module: (batch, num_nodes, input_dim)
    B, N, C = 2, 16, 4
    C_out = C
    L = NUM_LAYERS

    key = jax.random.PRNGKey(0)
    k = jax.random.split(key, 8)

    x = jax.random.normal(k[0], (B, N, C), dtype=jnp.float32)
    adj = jax.random.uniform(k[1], (N, N), dtype=jnp.float32)

    # Deterministic parameter init (shapes match the PyTorch module's __init__).
    xavier_bound = np.sqrt(6.0 / (C + C))
    gcn_w = jax.random.uniform(k[2], (L, C, C), minval=-xavier_bound,
                               maxval=xavier_bound, dtype=jnp.float32)
    conv_bound = 1.0 / np.sqrt(C * KERNEL_SIZE)
    tcn_w = jax.random.uniform(k[3], (L, C, C, KERNEL_SIZE), minval=-conv_bound,
                               maxval=conv_bound, dtype=jnp.float32)
    tcn_b = jax.random.uniform(k[4], (L, C), minval=-conv_bound,
                               maxval=conv_bound, dtype=jnp.float32)
    lin_bound = 1.0 / np.sqrt(C)
    out_w = jax.random.uniform(k[5], (C_out, C), minval=-lin_bound,
                               maxval=lin_bound, dtype=jnp.float32)
    out_b = jax.random.uniform(k[6], (C_out,), minval=-lin_bound,
                               maxval=lin_bound, dtype=jnp.float32)

    out = graph_wavenet_forward(x, adj, gcn_w, tcn_w, tcn_b, out_w, out_b)
    out = jax.block_until_ready(out)

    ref = reference_forward(x, adj, gcn_w, tcn_w, tcn_b, out_w, out_b)
    np.testing.assert_allclose(np.asarray(out), np.asarray(ref),
                               rtol=1e-4, atol=1e-4)

    print("KERNEL_OK")
</pallas_src>

<mosaic_0001>
module attributes {stable_mosaic.version = 11 : i64} {
  func.func @gwn_kernel(%arg0: i32, %arg1: memref<2x16x4xf32, #tpu.memory_space<vmem>>, %arg2: memref<16x16xf32, #tpu.memory_space<vmem>>, %arg3: memref<3x4x4xf32, #tpu.memory_space<vmem>>, %arg4: memref<3x8x4xf32, #tpu.memory_space<vmem>>, %arg5: memref<3x1x4xf32, #tpu.memory_space<vmem>>, %arg6: memref<4x4xf32, #tpu.memory_space<vmem>>, %arg7: memref<1x4xf32, #tpu.memory_space<vmem>>, %arg8: memref<2x16x4xf32, #tpu.memory_space<vmem>>) attributes {dimension_semantics = [#tpu.dimension_semantics<parallel>], iteration_bounds = array<i64: 1>, scalar_prefetch = 0 : i64, scratch_operands = 0 : i64, tpu.core_type = #tpu.core_type<tc>, window_params = [{transform_indices = @transform_0, window_bounds = array<i64: 2, 16, 4>}, {pipeline_mode = #tpu.pipeline_mode<synchronous>, transform_indices = @transform_1, window_bounds = array<i64: 16, 16>}, {pipeline_mode = #tpu.pipeline_mode<synchronous>, transform_indices = @transform_2, window_bounds = array<i64: 3, 4, 4>}, {pipeline_mode = #tpu.pipeline_mode<synchronous>, transform_indices = @transform_3, window_bounds = array<i64: 3, 8, 4>}, {pipeline_mode = #tpu.pipeline_mode<synchronous>, transform_indices = @transform_4, window_bounds = array<i64: 3, 1, 4>}, {pipeline_mode = #tpu.pipeline_mode<synchronous>, transform_indices = @transform_5, window_bounds = array<i64: 4, 4>}, {pipeline_mode = #tpu.pipeline_mode<synchronous>, transform_indices = @transform_6, window_bounds = array<i64: 1, 4>}, {transform_indices = @transform_7, window_bounds = array<i64: 2, 16, 4>}]} {
    %c0 = arith.constant 0 : index
    %c0_0 = arith.constant 0 : index
    %0 = vector.load %arg2[%c0, %c0_0] : memref<16x16xf32, #tpu.memory_space<vmem>>, vector<16x16xf32>
    %1 = tpu.iota {dimensions = array<i32: 0>} : vector<16x1xi32>
    %c0_1 = arith.constant 0 : index
    %c0_2 = arith.constant 0 : index
    %c0_3 = arith.constant 0 : index
    %2 = vector.load %arg1[%c0_1, %c0_2, %c0_3] : memref<2x16x4xf32, #tpu.memory_space<vmem>>, vector<1x16x4xf32>
    %3 = vector.shape_cast %2 : vector<1x16x4xf32> to vector<16x4xf32>
    %c0_4 = arith.constant 0 : index
    %c0_5 = arith.constant 0 : index
    %c0_6 = arith.constant 0 : index
    %4 = vector.load %arg3[%c0_4, %c0_5, %c0_6] : memref<3x4x4xf32, #tpu.memory_space<vmem>>, vector<1x4x4xf32>
    %5 = vector.shape_cast %4 : vector<1x4x4xf32> to vector<4x4xf32>
    %cst = arith.constant dense<0.000000e+00> : vector<16x4xf32>
    %6 = tpu.matmul %3, %5, %cst {dimension_numbers = #tpu.dot_dimension_numbers<[1], [0], [0], [1], [0, 0, 1, 1], [], []>} : vector<16x4xf32>, vector<4x4xf32>, vector<16x4xf32> -> vector<16x4xf32>
    %cst_7 = arith.constant dense<0.000000e+00> : vector<16x4xf32>
    %7 = tpu.matmul %0, %6, %cst_7 {dimension_numbers = #tpu.dot_dimension_numbers<[1], [0], [0], [1], [0, 0, 1, 1], [], []>} : vector<16x16xf32>, vector<16x4xf32>, vector<16x4xf32> -> vector<16x4xf32>
    %c1_i32 = arith.constant 1 : i32
    %8 = vector.broadcast %c1_i32 : i32 to vector<16x1xi32>
    %9 = arith.cmpi sge, %1, %8 : vector<16x1xi32>
    %c1_i32_8 = arith.constant 1 : i32
    %10 = tpu.dynamic_rotate %7 by %c1_i32_8 dim 0 : vector<16x4xf32>, i32 -> vector<16x4xf32>
    %cst_9 = arith.constant 0.000000e+00 : f32
    %11 = vector.shape_cast %9 : vector<16x1xi1> to vector<16x1xi1>
    %12 = vector.broadcast %11 : vector<16x1xi1> to vector<16x4xi1>
    %13 = vector.broadcast %cst_9 : f32 to vector<16x4xf32>
    %14 = arith.select %12, %10, %13 : vector<16x4xi1>, vector<16x4xf32>
    %15 = tpu.concatenate %7, %14 in 1 : vector<16x4xf32>, vector<16x4xf32> -> vector<16x8xf32>
    %c0_10 = arith.constant 0 : index
    %c0_11 = arith.constant 0 : index
    %c0_12 = arith.constant 0 : index
    %16 = vector.load %arg4[%c0_10, %c0_11, %c0_12] : memref<3x8x4xf32, #tpu.memory_space<vmem>>, vector<1x8x4xf32>
    %17 = vector.shape_cast %16 : vector<1x8x4xf32> to vector<8x4xf32>
    %cst_13 = arith.constant dense<0.000000e+00> : vector<16x4xf32>
    %18 = tpu.matmul %15, %17, %cst_13 {dimension_numbers = #tpu.dot_dimension_numbers<[1], [0], [0], [1], [0, 0, 1, 1], [], []>} : vector<16x8xf32>, vector<8x4xf32>, vector<16x4xf32> -> vector<16x4xf32>
    %c0_14 = arith.constant 0 : index
    %c0_15 = arith.constant 0 : index
    %c0_16 = arith.constant 0 : index
    %19 = vector.load %arg5[%c0_14, %c0_15, %c0_16] : memref<3x1x4xf32, #tpu.memory_space<vmem>>, vector<1x1x4xf32>
    %20 = vector.shape_cast %19 : vector<1x1x4xf32> to vector<1x4xf32>
    %21 = vector.broadcast %20 : vector<1x4xf32> to vector<16x4xf32>
    %22 = arith.addf %18, %21 : vector<16x4xf32>
    %cst_17 = arith.constant 0.000000e+00 : f32
    %23 = vector.broadcast %cst_17 : f32 to vector<16x4xf32>
    %24 = arith.maximumf %22, %23 : vector<16x4xf32>
    %c1 = arith.constant 1 : index
    %c0_18 = arith.constant 0 : index
    %c0_19 = arith.constant 0 : index
    %25 = vector.load %arg3[%c1, %c0_18, %c0_19] : memref<3x4x4xf32, #tpu.memory_space<vmem>>, vector<1x4x4xf32>
    %26 = vector.shape_cast %25 : vector<1x4x4xf32> to vector<4x4xf32>
    %cst_20 = arith.constant dense<0.000000e+00> : vector<16x4xf32>
    %27 = tpu.matmul %24, %26, %cst_20 {dimension_numbers = #tpu.dot_dimension_numbers<[1], [0], [0], [1], [0, 0, 1, 1], [], []>} : vector<16x4xf32>, vector<4x4xf32>, vector<16x4xf32> -> vector<16x4xf32>
    %cst_21 = arith.constant dense<0.000000e+00> : vector<16x4xf32>
    %28 = tpu.matmul %0, %27, %cst_21 {dimension_numbers = #tpu.dot_dimension_numbers<[1], [0], [0], [1], [0, 0, 1, 1], [], []>} : vector<16x16xf32>, vector<16x4xf32>, vector<16x4xf32> -> vector<16x4xf32>
    %c2_i32 = arith.constant 2 : i32
    %29 = vector.broadcast %c2_i32 : i32 to vector<16x1xi32>
    %30 = arith.cmpi sge, %1, %29 : vector<16x1xi32>
    %c2_i32_22 = arith.constant 2 : i32
    %31 = tpu.dynamic_rotate %28 by %c2_i32_22 dim 0 : vector<16x4xf32>, i32 -> vector<16x4xf32>
    %cst_23 = arith.constant 0.000000e+00 : f32
    %32 = vector.shape_cast %30 : vector<16x1xi1> to vector<16x1xi1>
    %33 = vector.broadcast %32 : vector<16x1xi1> to vector<16x4xi1>
    %34 = vector.broadcast %cst_23 : f32 to vector<16x4xf32>
    %35 = arith.select %33, %31, %34 : vector<16x4xi1>, vector<16x4xf32>
    %36 = tpu.concatenate %28, %35 in 1 : vector<16x4xf32>, vector<16x4xf32> -> vector<16x8xf32>
    %c1_24 = arith.constant 1 : index
    %c0_25 = arith.constant 0 : index
    %c0_26 = arith.constant 0 : index
    %37 = vector.load %arg4[%c1_24, %c0_25, %c0_26] : memref<3x8x4xf32, #tpu.memory_space<vmem>>, vector<1x8x4xf32>
    %38 = vector.shape_cast %37 : vector<1x8x4xf32> to vector<8x4xf32>
    %cst_27 = arith.constant dense<0.000000e+00> : vector<16x4xf32>
    %39 = tpu.matmul %36, %38, %cst_27 {dimension_numbers = #tpu.dot_dimension_numbers<[1], [0], [0], [1], [0, 0, 1, 1], [], []>} : vector<16x8xf32>, vector<8x4xf32>, vector<16x4xf32> -> vector<16x4xf32>
    %c1_28 = arith.constant 1 : index
    %c0_29 = arith.constant 0 : index
    %c0_30 = arith.constant 0 : index
    %40 = vector.load %arg5[%c1_28, %c0_29, %c0_30] : memref<3x1x4xf32, #tpu.memory_space<vmem>>, vector<1x1x4xf32>
    %41 = vector.shape_cast %40 : vector<1x1x4xf32> to vector<1x4xf32>
    %42 = vector.broadcast %41 : vector<1x4xf32> to vector<16x4xf32>
    %43 = arith.addf %39, %42 : vector<16x4xf32>
    %cst_31 = arith.constant 0.000000e+00 : f32
    %44 = vector.broadcast %cst_31 : f32 to vector<16x4xf32>
    %45 = arith.maximumf %43, %44 : vector<16x4xf32>
    %c2 = arith.constant 2 : index
    %c0_32 = arith.constant 0 : index
    %c0_33 = arith.constant 0 : index
    %46 = vector.load %arg3[%c2, %c0_32, %c0_33] : memref<3x4x4xf32, #tpu.memory_space<vmem>>, vector<1x4x4xf32>
    %47 = vector.shape_cast %46 : vector<1x4x4xf32> to vector<4x4xf32>
    %cst_34 = arith.constant dense<0.000000e+00> : vector<16x4xf32>
    %48 = tpu.matmul %45, %47, %cst_34 {dimension_numbers = #tpu.dot_dimension_numbers<[1], [0], [0], [1], [0, 0, 1, 1], [], []>} : vector<16x4xf32>, vector<4x4xf32>, vector<16x4xf32> -> vector<16x4xf32>
    %cst_35 = arith.constant dense<0.000000e+00> : vector<16x4xf32>
    %49 = tpu.matmul %0, %48, %cst_35 {dimension_numbers = #tpu.dot_dimension_numbers<[1], [0], [0], [1], [0, 0, 1, 1], [], []>} : vector<16x16xf32>, vector<16x4xf32>, vector<16x4xf32> -> vector<16x4xf32>
    %c4_i32 = arith.constant 4 : i32
    %50 = vector.broadcast %c4_i32 : i32 to vector<16x1xi32>
    %51 = arith.cmpi sge, %1, %50 : vector<16x1xi32>
    %c4_i32_36 = arith.constant 4 : i32
    %52 = tpu.dynamic_rotate %49 by %c4_i32_36 dim 0 : vector<16x4xf32>, i32 -> vector<16x4xf32>
    %cst_37 = arith.constant 0.000000e+00 : f32
    %53 = vector.shape_cast %51 : vector<16x1xi1> to vector<16x1xi1>
    %54 = vector.broadcast %53 : vector<16x1xi1> to vector<16x4xi1>
    %55 = vector.broadcast %cst_37 : f32 to vector<16x4xf32>
    %56 = arith.select %54, %52, %55 : vector<16x4xi1>, vector<16x4xf32>
    %57 = tpu.concatenate %49, %56 in 1 : vector<16x4xf32>, vector<16x4xf32> -> vector<16x8xf32>
    %c2_38 = arith.constant 2 : index
    %c0_39 = arith.constant 0 : index
    %c0_40 = arith.constant 0 : index
    %58 = vector.load %arg4[%c2_38, %c0_39, %c0_40] : memref<3x8x4xf32, #tpu.memory_space<vmem>>, vector<1x8x4xf32>
    %59 = vector.shape_cast %58 : vector<1x8x4xf32> to vector<8x4xf32>
    %cst_41 = arith.constant dense<0.000000e+00> : vector<16x4xf32>
    %60 = tpu.matmul %57, %59, %cst_41 {dimension_numbers = #tpu.dot_dimension_numbers<[1], [0], [0], [1], [0, 0, 1, 1], [], []>} : vector<16x8xf32>, vector<8x4xf32>, vector<16x4xf32> -> vector<16x4xf32>
    %c2_42 = arith.constant 2 : index
    %c0_43 = arith.constant 0 : index
    %c0_44 = arith.constant 0 : index
    %61 = vector.load %arg5[%c2_42, %c0_43, %c0_44] : memref<3x1x4xf32, #tpu.memory_space<vmem>>, vector<1x1x4xf32>
    %62 = vector.shape_cast %61 : vector<1x1x4xf32> to vector<1x4xf32>
    %63 = vector.broadcast %62 : vector<1x4xf32> to vector<16x4xf32>
    %64 = arith.addf %60, %63 : vector<16x4xf32>
    %cst_45 = arith.constant 0.000000e+00 : f32
    %65 = vector.broadcast %cst_45 : f32 to vector<16x4xf32>
    %66 = arith.maximumf %64, %65 : vector<16x4xf32>
    %c0_46 = arith.constant 0 : index
    %c0_47 = arith.constant 0 : index
    %67 = vector.load %arg6[%c0_46, %c0_47] : memref<4x4xf32, #tpu.memory_space<vmem>>, vector<4x4xf32>
    %cst_48 = arith.constant dense<0.000000e+00> : vector<16x4xf32>
    %68 = tpu.matmul %66, %67, %cst_48 {dimension_numbers = #tpu.dot_dimension_numbers<[1], [0], [0], [1], [0, 0, 1, 1], [], []>} : vector<16x4xf32>, vector<4x4xf32>, vector<16x4xf32> -> vector<16x4xf32>
    %c0_49 = arith.constant 0 : index
    %c0_50 = arith.constant 0 : index
    %69 = vector.load %arg7[%c0_49, %c0_50] : memref<1x4xf32, #tpu.memory_space<vmem>>, vector<1x4xf32>
    %70 = vector.broadcast %69 : vector<1x4xf32> to vector<16x4xf32>
    %71 = arith.addf %68, %70 : vector<16x4xf32>
    %c0_51 = arith.constant 0 : index
    %c0_52 = arith.constant 0 : index
    %c0_53 = arith.constant 0 : index
    %72 = vector.load %arg8[%c0_51, %c0_52, %c0_53] : memref<2x16x4xf32, #tpu.memory_space<vmem>>, vector<1x16x4xf32>
    %73 = vector.shape_cast %72 : vector<1x16x4xf32> to vector<16x4xf32>
    %74 = vector.shape_cast %71 : vector<16x4xf32> to vector<1x16x4xf32>
    tpu.vector_store %arg8[%c0_51, %c0_52, %c0_53], %74 {strides = array<i32>} : memref<2x16x4xf32, #tpu.memory_space<vmem>>, vector<1x16x4xf32>,
    %c1_54 = arith.constant 1 : index
    %c0_55 = arith.constant 0 : index
    %c0_56 = arith.constant 0 : index
    %75 = vector.load %arg1[%c1_54, %c0_55, %c0_56] : memref<2x16x4xf32, #tpu.memory_space<vmem>>, vector<1x16x4xf32>
    %76 = vector.shape_cast %75 : vector<1x16x4xf32> to vector<16x4xf32>
    %c0_57 = arith.constant 0 : index
    %c0_58 = arith.constant 0 : index
    %c0_59 = arith.constant 0 : index
    %77 = vector.load %arg3[%c0_57, %c0_58, %c0_59] : memref<3x4x4xf32, #tpu.memory_space<vmem>>, vector<1x4x4xf32>
    %78 = vector.shape_cast %77 : vector<1x4x4xf32> to vector<4x4xf32>
    %cst_60 = arith.constant dense<0.000000e+00> : vector<16x4xf32>
    %79 = tpu.matmul %76, %78, %cst_60 {dimension_numbers = #tpu.dot_dimension_numbers<[1], [0], [0], [1], [0, 0, 1, 1], [], []>} : vector<16x4xf32>, vector<4x4xf32>, vector<16x4xf32> -> vector<16x4xf32>
    %cst_61 = arith.constant dense<0.000000e+00> : vector<16x4xf32>
    %80 = tpu.matmul %0, %79, %cst_61 {dimension_numbers = #tpu.dot_dimension_numbers<[1], [0], [0], [1], [0, 0, 1, 1], [], []>} : vector<16x16xf32>, vector<16x4xf32>, vector<16x4xf32> -> vector<16x4xf32>
    %c1_i32_62 = arith.constant 1 : i32
    %81 = vector.broadcast %c1_i32_62 : i32 to vector<16x1xi32>
    %82 = arith.cmpi sge, %1, %81 : vector<16x1xi32>
    %c1_i32_63 = arith.constant 1 : i32
    %83 = tpu.dynamic_rotate %80 by %c1_i32_63 dim 0 : vector<16x4xf32>, i32 -> vector<16x4xf32>
    %cst_64 = arith.constant 0.000000e+00 : f32
    %84 = vector.shape_cast %82 : vector<16x1xi1> to vector<16x1xi1>
    %85 = vector.broadcast %84 : vector<16x1xi1> to vector<16x4xi1>
    %86 = vector.broadcast %cst_64 : f32 to vector<16x4xf32>
    %87 = arith.select %85, %83, %86 : vector<16x4xi1>, vector<16x4xf32>
    %88 = tpu.concatenate %80, %87 in 1 : vector<16x4xf32>, vector<16x4xf32> -> vector<16x8xf32>
    %c0_65 = arith.constant 0 : index
    %c0_66 = arith.constant 0 : index
    %c0_67 = arith.constant 0 : index
    %89 = vector.load %arg4[%c0_65, %c0_66, %c0_67] : memref<3x8x4xf32, #tpu.memory_space<vmem>>, vector<1x8x4xf32>
    %90 = vector.shape_cast %89 : vector<1x8x4xf32> to vector<8x4xf32>
    %cst_68 = arith.constant dense<0.000000e+00> : vector<16x4xf32>
    %91 = tpu.matmul %88, %90, %cst_68 {dimension_numbers = #tpu.dot_dimension_numbers<[1], [0], [0], [1], [0, 0, 1, 1], [], []>} : vector<16x8xf32>, vector<8x4xf32>, vector<16x4xf32> -> vector<16x4xf32>
    %c0_69 = arith.constant 0 : index
    %c0_70 = arith.constant 0 : index
    %c0_71 = arith.constant 0 : index
    %92 = vector.load %arg5[%c0_69, %c0_70, %c0_71] : memref<3x1x4xf32, #tpu.memory_space<vmem>>, vector<1x1x4xf32>
    %93 = vector.shape_cast %92 : vector<1x1x4xf32> to vector<1x4xf32>
    %94 = vector.broadcast %93 : vector<1x4xf32> to vector<16x4xf32>
    %95 = arith.addf %91, %94 : vector<16x4xf32>
    %cst_72 = arith.constant 0.000000e+00 : f32
    %96 = vector.broadcast %cst_72 : f32 to vector<16x4xf32>
    %97 = arith.maximumf %95, %96 : vector<16x4xf32>
    %c1_73 = arith.constant 1 : index
    %c0_74 = arith.constant 0 : index
    %c0_75 = arith.constant 0 : index
    %98 = vector.load %arg3[%c1_73, %c0_74, %c0_75] : memref<3x4x4xf32, #tpu.memory_space<vmem>>, vector<1x4x4xf32>
    %99 = vector.shape_cast %98 : vector<1x4x4xf32> to vector<4x4xf32>
    %cst_76 = arith.constant dense<0.000000e+00> : vector<16x4xf32>
    %100 = tpu.matmul %97, %99, %cst_76 {dimension_numbers = #tpu.dot_dimension_numbers<[1], [0], [0], [1], [0, 0, 1, 1], [], []>} : vector<16x4xf32>, vector<4x4xf32>, vector<16x4xf32> -> vector<16x4xf32>
    %cst_77 = arith.constant dense<0.000000e+00> : vector<16x4xf32>
    %101 = tpu.matmul %0, %100, %cst_77 {dimension_numbers = #tpu.dot_dimension_numbers<[1], [0], [0], [1], [0, 0, 1, 1], [], []>} : vector<16x16xf32>, vector<16x4xf32>, vector<16x4xf32> -> vector<16x4xf32>
    %c2_i32_78 = arith.constant 2 : i32
    %102 = vector.broadcast %c2_i32_78 : i32 to vector<16x1xi32>
    %103 = arith.cmpi sge, %1, %102 : vector<16x1xi32>
    %c2_i32_79 = arith.constant 2 : i32
    %104 = tpu.dynamic_rotate %101 by %c2_i32_79 dim 0 : vector<16x4xf32>, i32 -> vector<16x4xf32>
    %cst_80 = arith.constant 0.000000e+00 : f32
    %105 = vector.shape_cast %103 : vector<16x1xi1> to vector<16x1xi1>
    %106 = vector.broadcast %105 : vector<16x1xi1> to vector<16x4xi1>
    %107 = vector.broadcast %cst_80 : f32 to vector<16x4xf32>
    %108 = arith.select %106, %104, %107 : vector<16x4xi1>, vector<16x4xf32>
    %109 = tpu.concatenate %101, %108 in 1 : vector<16x4xf32>, vector<16x4xf32> -> vector<16x8xf32>
    %c1_81 = arith.constant 1 : index
    %c0_82 = arith.constant 0 : index
    %c0_83 = arith.constant 0 : index
    %110 = vector.load %arg4[%c1_81, %c0_82, %c0_83] : memref<3x8x4xf32, #tpu.memory_space<vmem>>, vector<1x8x4xf32>
    %111 = vector.shape_cast %110 : vector<1x8x4xf32> to vector<8x4xf32>
    %cst_84 = arith.constant dense<0.000000e+00> : vector<16x4xf32>
    %112 = tpu.matmul %109, %111, %cst_84 {dimension_numbers = #tpu.dot_dimension_numbers<[1], [0], [0], [1], [0, 0, 1, 1], [], []>} : vector<16x8xf32>, vector<8x4xf32>, vector<16x4xf32> -> vector<16x4xf32>
    %c1_85 = arith.constant 1 : index
    %c0_86 = arith.constant 0 : index
    %c0_87 = arith.constant 0 : index
    %113 = vector.load %arg5[%c1_85, %c0_86, %c0_87] : memref<3x1x4xf32, #tpu.memory_space<vmem>>, vector<1x1x4xf32>
    %114 = vector.shape_cast %113 : vector<1x1x4xf32> to vector<1x4xf32>
    %115 = vector.broadcast %114 : vector<1x4xf32> to vector<16x4xf32>
    %116 = arith.addf %112, %115 : vector<16x4xf32>
    %cst_88 = arith.constant 0.000000e+00 : f32
    %117 = vector.broadcast %cst_88 : f32 to vector<16x4xf32>
    %118 = arith.maximumf %116, %117 : vector<16x4xf32>
    %c2_89 = arith.constant 2 : index
    %c0_90 = arith.constant 0 : index
    %c0_91 = arith.constant 0 : index
    %119 = vector.load %arg3[%c2_89, %c0_90, %c0_91] : memref<3x4x4xf32, #tpu.memory_space<vmem>>, vector<1x4x4xf32>
    %120 = vector.shape_cast %119 : vector<1x4x4xf32> to vector<4x4xf32>
    %cst_92 = arith.constant dense<0.000000e+00> : vector<16x4xf32>
    %121 = tpu.matmul %118, %120, %cst_92 {dimension_numbers = #tpu.dot_dimension_numbers<[1], [0], [0], [1], [0, 0, 1, 1], [], []>} : vector<16x4xf32>, vector<4x4xf32>, vector<16x4xf32> -> vector<16x4xf32>
    %cst_93 = arith.constant dense<0.000000e+00> : vector<16x4xf32>
    %122 = tpu.matmul %0, %121, %cst_93 {dimension_numbers = #tpu.dot_dimension_numbers<[1], [0], [0], [1], [0, 0, 1, 1], [], []>} : vector<16x16xf32>, vector<16x4xf32>, vector<16x4xf32> -> vector<16x4xf32>
    %c4_i32_94 = arith.constant 4 : i32
    %123 = vector.broadcast %c4_i32_94 : i32 to vector<16x1xi32>
    %124 = arith.cmpi sge, %1, %123 : vector<16x1xi32>
    %c4_i32_95 = arith.constant 4 : i32
    %125 = tpu.dynamic_rotate %122 by %c4_i32_95 dim 0 : vector<16x4xf32>, i32 -> vector<16x4xf32>
    %cst_96 = arith.constant 0.000000e+00 : f32
    %126 = vector.shape_cast %124 : vector<16x1xi1> to vector<16x1xi1>
    %127 = vector.broadcast %126 : vector<16x1xi1> to vector<16x4xi1>
    %128 = vector.broadcast %cst_96 : f32 to vector<16x4xf32>
    %129 = arith.select %127, %125, %128 : vector<16x4xi1>, vector<16x4xf32>
    %130 = tpu.concatenate %122, %129 in 1 : vector<16x4xf32>, vector<16x4xf32> -> vector<16x8xf32>
    %c2_97 = arith.constant 2 : index
    %c0_98 = arith.constant 0 : index
    %c0_99 = arith.constant 0 : index
    %131 = vector.load %arg4[%c2_97, %c0_98, %c0_99] : memref<3x8x4xf32, #tpu.memory_space<vmem>>, vector<1x8x4xf32>
    %132 = vector.shape_cast %131 : vector<1x8x4xf32> to vector<8x4xf32>
    %cst_100 = arith.constant dense<0.000000e+00> : vector<16x4xf32>
    %133 = tpu.matmul %130, %132, %cst_100 {dimension_numbers = #tpu.dot_dimension_numbers<[1], [0], [0], [1], [0, 0, 1, 1], [], []>} : vector<16x8xf32>, vector<8x4xf32>, vector<16x4xf32> -> vector<16x4xf32>
    %c2_101 = arith.constant 2 : index
    %c0_102 = arith.constant 0 : index
    %c0_103 = arith.constant 0 : index
    %134 = vector.load %arg5[%c2_101, %c0_102, %c0_103] : memref<3x1x4xf32, #tpu.memory_space<vmem>>, vector<1x1x4xf32>
    %135 = vector.shape_cast %134 : vector<1x1x4xf32> to vector<1x4xf32>
    %136 = vector.broadcast %135 : vector<1x4xf32> to vector<16x4xf32>
    %137 = arith.addf %133, %136 : vector<16x4xf32>
    %cst_104 = arith.constant 0.000000e+00 : f32
    %138 = vector.broadcast %cst_104 : f32 to vector<16x4xf32>
    %139 = arith.maximumf %137, %138 : vector<16x4xf32>
    %c0_105 = arith.constant 0 : index
    %c0_106 = arith.constant 0 : index
    %140 = vector.load %arg6[%c0_105, %c0_106] : memref<4x4xf32, #tpu.memory_space<vmem>>, vector<4x4xf32>
    %cst_107 = arith.constant dense<0.000000e+00> : vector<16x4xf32>
    %141 = tpu.matmul %139, %140, %cst_107 {dimension_numbers = #tpu.dot_dimension_numbers<[1], [0], [0], [1], [0, 0, 1, 1], [], []>} : vector<16x4xf32>, vector<4x4xf32>, vector<16x4xf32> -> vector<16x4xf32>
    %c0_108 = arith.constant 0 : index
    %c0_109 = arith.constant 0 : index
    %142 = vector.load %arg7[%c0_108, %c0_109] : memref<1x4xf32, #tpu.memory_space<vmem>>, vector<1x4xf32>
    %143 = vector.broadcast %142 : vector<1x4xf32> to vector<16x4xf32>
    %144 = arith.addf %141, %143 : vector<16x4xf32>
    %c1_110 = arith.constant 1 : index
    %c0_111 = arith.constant 0 : index
    %c0_112 = arith.constant 0 : index
    %145 = vector.load %arg8[%c1_110, %c0_111, %c0_112] : memref<2x16x4xf32, #tpu.memory_space<vmem>>, vector<1x16x4xf32>
    %146 = vector.shape_cast %145 : vector<1x16x4xf32> to vector<16x4xf32>
    %147 = vector.shape_cast %144 : vector<16x4xf32> to vector<1x16x4xf32>
    tpu.vector_store %arg8[%c1_110, %c0_111, %c0_112], %147 {strides = array<i32>} : memref<2x16x4xf32, #tpu.memory_space<vmem>>, vector<1x16x4xf32>,
    return
  }
  func.func @transform_0(%arg0: i32) -> (i32, i32, i32) {
    %c0_i32 = arith.constant 0 : i32
    %c0_i32_0 = arith.constant 0 : i32
    %c0_i32_1 = arith.constant 0 : i32
    return %arg0, %c0_i32, %c0_i32_0 : i32, i32, i32
  }
  func.func @transform_1(%arg0: i32) -> (i32, i32) {
    %c0_i32 = arith.constant 0 : i32
    %c0_i32_0 = arith.constant 0 : i32
    %c0_i32_1 = arith.constant 0 : i32
    return %c0_i32, %c0_i32_0 : i32, i32
  }
  func.func @transform_2(%arg0: i32) -> (i32, i32, i32) {
    %c0_i32 = arith.constant 0 : i32
    %c0_i32_0 = arith.constant 0 : i32
    %c0_i32_1 = arith.constant 0 : i32
    %c0_i32_2 = arith.constant 0 : i32
    return %c0_i32, %c0_i32_0, %c0_i32_1 : i32, i32, i32
  }
  func.func @transform_3(%arg0: i32) -> (i32, i32, i32) {
    %c0_i32 = arith.constant 0 : i32
    %c0_i32_0 = arith.constant 0 : i32
    %c0_i32_1 = arith.constant 0 : i32
    %c0_i32_2 = arith.constant 0 : i32
    return %c0_i32, %c0_i32_0, %c0_i32_1 : i32, i32, i32
  }
  func.func @transform_4(%arg0: i32) -> (i32, i32, i32) {
    %c0_i32 = arith.constant 0 : i32
    %c0_i32_0 = arith.constant 0 : i32
    %c0_i32_1 = arith.constant 0 : i32
    %c0_i32_2 = arith.constant 0 : i32
    return %c0_i32, %c0_i32_0, %c0_i32_1 : i32, i32, i32
  }
  func.func @transform_5(%arg0: i32) -> (i32, i32) {
    %c0_i32 = arith.constant 0 : i32
    %c0_i32_0 = arith.constant 0 : i32
    %c0_i32_1 = arith.constant 0 : i32
    return %c0_i32, %c0_i32_0 : i32, i32
  }
  func.func @transform_6(%arg0: i32) -> (i32, i32) {
    %c0_i32 = arith.constant 0 : i32
    %c0_i32_0 = arith.constant 0 : i32
    %c0_i32_1 = arith.constant 0 : i32
    return %c0_i32, %c0_i32_0 : i32, i32
  }
  func.func @transform_7(%arg0: i32) -> (i32, i32, i32) {
    %c0_i32 = arith.constant 0 : i32
    %c0_i32_0 = arith.constant 0 : i32
    %c0_i32_1 = arith.constant 0 : i32
    return %arg0, %c0_i32, %c0_i32_0 : i32, i32, i32
  }
}

</mosaic_0001>

<bundles_post_ra>
// kernel: tpu_custom_call.1
= control target key start
LH: loop header
LB: loop body
LE: loop exit
PB: predicated region body
PF: predicated region fallthrough
CT: control target
= control target key end

     0   :  { %vm41_vm0 = vcmask 1043456   ;;  %vm34_vm1 = vcmask 31744   ;;  %vm120_vm2 = vcmask 130048   ;;  %v28_v8 = vlaneseq  ;;  %s2445_s2 = inlined_call_operand.vmem [shape: f32[3,4,4], index: 2, kind: input, shape index: {}]   ;;  %s2446_s0 = inlined_call_operand.vmem [shape: f32[2,16,4], index: 0, kind: input, shape index: {}]   ;;  %s2447_s1 = inlined_call_operand.vmem [shape: f32[16,16], index: 1, kind: input, shape index: {}]   ;;  %s2448_s3 = inlined_call_operand.vmem [shape: f32[3,8,4], index: 3, kind: input, shape index: {}]   ;;  %s2449_s4 = inlined_call_operand.vmem [shape: f32[3,1,4], index: 4, kind: input, shape index: {}]   ;;  %s2450_s5 = inlined_call_operand.vmem [shape: f32[4,4], index: 5, kind: input, shape index: {}]   ;;  %s2451_s6 = inlined_call_operand.vmem [shape: f32[1,4], index: 6, kind: input, shape index: {}]   ;;  %s2452_s7 = inlined_call_operand.vmem [shape: f32[2,16,4], index: 7, kind: output, shape index: {}]  }
   0x1   :  { %v33_v0 = vld [vmem:[%s2445_s2] sm:$0xf]  ;;  %v32_v2 = vld [vmem:[%s2446_s0 + $0x8] sm:$0xff]  ;;  %vm233_vm5 = vcmask 64512   ;;  %v1876_v22 = vld [vmem:[%s2445_s2 + $0x4] sm:$0xf] }
   0x2   :  { %v31_v1 = vld [vmem:[%s2446_s0] sm:$0xff]  ;;  %2006 = vmatprep.subr.msk.mxu0 %vm41_vm0, %v33_v0  ;;  %v2207_v7 = vld [vmem:[%s2447_s1 + $0x8] sm:$0xff]  ;;  %v2218_v10 = vshrl.u32 %v28_v8, 7  ;;  %v2294_v56 = vld [vmem:[%s2448_s3 + $0x10] sm:$0xff] }
   0x3   :  { %2008 = vmatprep.mubr.msk.f32.mxu0 %vm34_vm1, %v31_v1  ;;  %2007 = vmatpush3.msk.msra.mxu0 %vm41_vm0, %v33_v0  ;;  %v2200_v3 = vld [vmem:[%s2447_s1] sm:$0xff]  ;;  %s2143_s1 = smov 4   ;;  %v2255_v33 = vld [vmem:[%s2448_s3 + $0x8] sm:$0xff]  ;;  %v1903_v8 = vld [vmem:[%s2446_s0 + $0x18] sm:$0xff] }
   0x4   :  { %2009 = vmatmul.mubr.msk.f32.vlgmr.msra.gmra.mrb[0].mxu0 %vm34_vm1, %v32_v2  ;;  %2015 = vmatprep.mubr.msk.f32.mxu1 %vm120_vm2, %v2200_v3  ;;  %v2214_v9 = vld [vmem:[%s2448_s3] sm:$0xff]  ;;  %vm206_vm3 = vcmp.lt.s32.totalorder %v2218_v10, 1  ;;  %vm202_vm4 = vcmp.ge.s32.totalorder %v2218_v10, 1  ;;  %vm482_vm6 = vcmp.lt.s32.totalorder %v2218_v10, 2  ;;  %vm478_vm7 = vcmp.ge.s32.totalorder %v2218_v10, 2 }
   0x5   :  { %2018 = vmatprep.subr.mxu0 %v2214_v9  ;;  %v2244_v23 = vld [vmem:[%s2449_s4] ss:$0 sm:$0xff]  ;;  %v1887_v45 = vld [vmem:[%s2445_s2 + $0x8] sm:$0xf]  ;;  %v2283_v46 = vld [vmem:[%s2449_s4 + $0x1] ss:$0 sm:$0xff] }
   0x6   :  { %2019 = vmatpush3.msra.mxu0 %v2214_v9  ;;  %v968_v57 = vld [vmem:[%s2445_s2] sm:$0xf]  ;;  %vm759_vm8 = vcmp.lt.s32.totalorder %v2218_v10, 4  ;;  %vm755_vm9 = vcmp.ge.s32.totalorder %v2218_v10, 4 }
  0xd7   :  { %v2010_v4 = vpop.f32.mrb[0].mxu0 }
  0xd8   :  { %v111_v5 = vpop.f32.mrb[1].mxu0 }
  0xd9   :  { %v2118_v6 = vpack.c.bf16 %v2010_v4, %v111_v5  ;;  %v1902_v5 = vld [vmem:[%s2446_s0 + $0x10] sm:$0xff] }
  0xdb   :  { %2119 = vmatprep.subr.bf16.mxu1 %v2118_v6 }
  0xdc   :  { %2121 = vmatpush3.bf16.msra.mxu1 %v2118_v6 }
  0xdd   :  { %2023 = vmatprep.subr.msk.mxu1 %vm41_vm0, %v1876_v22 }
  0xdf   :  { %2016 = vmatmul.mubr.msk.f32.vlgmr.msra.gmra.mrb[0].mxu1 %vm120_vm2, %v2207_v7 }
  0xe0   :  { %2024 = vmatpush3.msk.msra.mxu1 %vm41_vm0, %v1876_v22 }
  0xe1   :  { %2035 = vmatprep.subr.mxu1 %v2255_v33 }
 0x1b2   :  { %v2017_v11 = vpop.f32.mrb[0].mxu1 }
 0x1b3   :  { %v205_v12 = vrot.slane %v2017_v11, 7  ;;  %v193_v13 = vpop.f32.mrb[1].mxu1 }
 0x1b4   :  { %v204_v14 = vrot.slane %v193_v13, 7 }
 0x1b6   :  { %v208_v15 = vsel %vm206_vm3, %v205_v12, %v204_v14  ;;  %v207_v16 = vsel %vm206_vm3, %v204_v14, %v205_v12  ;;  %v2335_v12 = vld [vmem:[%s2449_s4 + $0x2] ss:$0 sm:$0xff] }
 0x1b7   :  { %v213_v17 = vsel %vm202_vm4, %v208_v15, 0.0 }
 0x1b8   :  { %217 = vrot.lane.b32.xlu0 %v213_v17, %s2143_s1 }
 0x1bc   :  { %219 = vrot.lane.b32.xlu0 %v207_v16, %s2143_s1 }
 0x22a   :  { %v218_v18 = vpop.permute.xlu0 %217 }
 0x22b   :  { %v223_v19 = vsel %vm34_vm1, %v193_v13, %v218_v18 }
 0x22c   :  { %2020 = vmatprep.mubr.msk.f32.mxu0 %vm233_vm5, %v223_v19 }
 0x22e   :  { %v220_v20 = vpop.permute.xlu0 %219 }
 0x22f   :  { %v224_v21 = vsel %vm34_vm1, %v2017_v11, %v220_v20  ;;  %v871_v11 = vld [vmem:[%s2450_s5] sm:$0xf] }
 0x230   :  { %2021 = vmatmul.mubr.msk.f32.vlgmr.msra.gmra.mrb[2].mxu0 %vm233_vm5, %v224_v21  ;;  %v2348_v21 = vld [vmem:[%s2451_s6] ss:$0 sm:$0xff] }
 0x231   :  { %2032 = vmatprep.mubr.msk.f32.mxu0 %vm120_vm2, %v2200_v3 }
 0x303   :  { %v2022_v24 = vpop.f32.mrb[2].mxu0 }
 0x304   :  { %v312_v25 = vadd.f32 %v2022_v24, %v2244_v23  ;;  %v306_v26 = vpop.f32.mrb[3].mxu0 }
 0x305   :  { %v307_v27 = vadd.f32 %v2244_v23, %v306_v26 }
 0x306   :  { %v316_v29 = vmax.f32 %v312_v25, 0.0 }
 0x307   :  { %v315_v28 = vmax.f32 %v307_v27, 0.0 }
 0x309   :  { %2025 = vmatprep.mubr.msk.f32.mxu1 %vm34_vm1, %v315_v28 }
 0x30a   :  { %2026 = vmatmul.mubr.msk.f32.vlgmr.msra.gmra.mrb[2].mxu1 %vm34_vm1, %v316_v29 }
 0x30b   :  { %2036 = vmatpush3.msra.mxu1 %v2255_v33 }
 0x3dd   :  { %v2027_v30 = vpop.f32.mrb[2].mxu1 }
 0x3de   :  { %v394_v31 = vpop.f32.mrb[3].mxu1 }
 0x3df   :  { %v2122_v32 = vpack.c.bf16 %v2027_v30, %v394_v31 }
 0x3e1   :  { %2123 = vmatprep.subr.bf16.mxu0 %v2122_v32 }
 0x3e2   :  { %2125 = vmatpush3.bf16.msra.mxu0 %v2122_v32 }
 0x3e3   :  { %2040 = vmatprep.subr.msk.mxu0 %vm41_vm0, %v1887_v45 }
 0x3e5   :  { %2033 = vmatmul.mubr.msk.f32.vlgmr.msra.gmra.mrb[4].mxu0 %vm120_vm2, %v2207_v7 }
 0x3e6   :  { %2041 = vmatpush3.msk.msra.mxu0 %vm41_vm0, %v1887_v45 }
 0x3e7   :  { %2052 = vmatprep.subr.mxu0 %v2294_v56 }
 0x4b8   :  { %v2034_v34 = vpop.f32.mrb[4].mxu0 }
 0x4b9   :  { %v481_v35 = vrot.slane %v2034_v34, 6  ;;  %v469_v36 = vpop.f32.mrb[5].mxu0 }
 0x4ba   :  { %v480_v37 = vrot.slane %v469_v36, 6 }
 0x4bc   :  { %v484_v38 = vsel %vm482_vm6, %v481_v35, %v480_v37  ;;  %v483_v39 = vsel %vm482_vm6, %v480_v37, %v481_v35 }
 0x4bd   :  { %v489_v40 = vsel %vm478_vm7, %v484_v38, 0.0 }
 0x4be   :  { %493 = vrot.lane.b32.xlu1 %v489_v40, %s2143_s1 }
 0x4c2   :  { %495 = vrot.lane.b32.xlu1 %v483_v39, %s2143_s1  ;;  %v1912_v39 = vld [vmem:[%s2445_s2 + $0x4] sm:$0xf] }
 0x530   :  { %v494_v41 = vpop.permute.xlu1 %493 }
 0x531   :  { %v499_v42 = vsel %vm34_vm1, %v469_v36, %v494_v41 }
 0x532   :  { %2037 = vmatprep.mubr.msk.f32.mxu1 %vm233_vm5, %v499_v42 }
 0x534   :  { %v496_v43 = vpop.permute.xlu1 %495 }
 0x535   :  { %v500_v44 = vsel %vm34_vm1, %v2034_v34, %v496_v43 }
 0x536   :  { %2038 = vmatmul.mubr.msk.f32.vlgmr.msra.gmra.mrb[4].mxu1 %vm233_vm5, %v500_v44 }
 0x537   :  { %2049 = vmatprep.mubr.msk.f32.mxu1 %vm120_vm2, %v2200_v3 }
 0x609   :  { %v2039_v47 = vpop.f32.mrb[4].mxu1 }
 0x60a   :  { %v589_v48 = vadd.f32 %v2039_v47, %v2283_v46  ;;  %v583_v49 = vpop.f32.mrb[5].mxu1 }
 0x60b   :  { %v584_v50 = vadd.f32 %v2283_v46, %v583_v49 }
 0x60c   :  { %v593_v52 = vmax.f32 %v589_v48, 0.0 }
 0x60d   :  { %v592_v51 = vmax.f32 %v584_v50, 0.0 }
 0x60f   :  { %2042 = vmatprep.mubr.msk.f32.mxu0 %vm34_vm1, %v592_v51 }
 0x610   :  { %2043 = vmatmul.mubr.msk.f32.vlgmr.msra.gmra.mrb[6].mxu0 %vm34_vm1, %v593_v52 }
 0x611   :  { %2053 = vmatpush3.msra.mxu0 %v2294_v56 }
 0x612   :  { %2062 = vmatprep.subr.msk.mxu0 %vm41_vm0, %v968_v57 }
 0x6e3   :  { %v2044_v53 = vpop.f32.mrb[6].mxu0 }
 0x6e4   :  { %v671_v54 = vpop.f32.mrb[7].mxu0 }
 0x6e5   :  { %v2126_v55 = vpack.c.bf16 %v2044_v53, %v671_v54 }
 0x6e7   :  { %2127 = vmatprep.subr.bf16.mxu1 %v2126_v55 }
 0x6e8   :  { %2129 = vmatpush3.bf16.msra.mxu1 %v2126_v55 }
 0x6e9   :  { %2057 = vmatprep.subr.msk.mxu1 %vm41_vm0, %v871_v11 }
 0x6eb   :  { %2050 = vmatmul.mubr.msk.f32.vlgmr.msra.gmra.mrb[6].mxu1 %vm120_vm2, %v2207_v7 }
 0x6ec   :  { %2058 = vmatpush3.msk.msra.mxu1 %vm41_vm0, %v871_v11 }
 0x7be   :  { %v2051_v58 = vpop.f32.mrb[6].mxu1 }
 0x7bf   :  { %v758_v59 = vrot.slane %v2051_v58, 4  ;;  %v746_v60 = vpop.f32.mrb[7].mxu1 }
 0x7c0   :  { %v757_v61 = vrot.slane %v746_v60, 4 }
 0x7c2   :  { %v760_v62 = vsel %vm759_vm8, %v757_v61, %v758_v59  ;;  %v761_v63 = vsel %vm759_vm8, %v758_v59, %v757_v61 }
 0x7c3   :  { %772 = vrot.lane.b32.xlu1 %v760_v62, %s2143_s1  ;;  %v766_v0 = vsel %vm755_vm9, %v761_v63, 0.0 }
 0x7c4   :  { %770 = vrot.lane.b32.xlu0 %v766_v0, %s2143_s1 }
 0x835   :  { %v773_v1 = vpop.permute.xlu1 %772 }
 0x836   :  { %v771_v2 = vpop.permute.xlu0 %770  ;;  %v777_v6 = vsel %vm34_vm1, %v2051_v58, %v773_v1 }
 0x837   :  { %v776_v4 = vsel %vm34_vm1, %v746_v60, %v771_v2  ;;  %v1923_v60 = vld [vmem:[%s2445_s2 + $0x8] sm:$0xf] }
 0x838   :  { %2054 = vmatprep.mubr.msk.f32.mxu0 %vm233_vm5, %v776_v4 }
 0x839   :  { %2055 = vmatmul.mubr.msk.f32.vlgmr.msra.gmra.mrb[8].mxu0 %vm233_vm5, %v777_v6 }
 0x83a   :  { %2063 = vmatpush3.msk.msra.mxu0 %vm41_vm0, %v968_v57  ;;  %2064 = vmatprep.mubr.msk.f32.mxu0 %vm34_vm1, %v1902_v5 }
 0x83b   :  { %2074 = vmatprep.subr.mxu0 %v2214_v9 }
 0x83d   :  { %2065 = vmatmul.mubr.msk.f32.vlgmr.msra.gmra.mrb[10].mxu0 %vm34_vm1, %v1903_v8 }
 0x83e   :  { %2075 = vmatpush3.msra.mxu0 %v2214_v9 }
 0x90c   :  { %v2056_v13 = vpop.f32.mrb[8].mxu0 }
 0x90d   :  { %v866_v14 = vadd.f32 %v2056_v13, %v2335_v12  ;;  %v860_v15 = vpop.f32.mrb[9].mxu0 }
 0x90e   :  { %v861_v16 = vadd.f32 %v2335_v12, %v860_v15 }
 0x90f   :  { %v870_v18 = vmax.f32 %v866_v14, 0.0 }
 0x910   :  { %v869_v9 = vmax.f32 %v861_v16, 0.0  ;;  %v2066_v17 = vpop.f32.mrb[10].mxu0 }
 0x911   :  { %v1044_v19 = vpop.f32.mrb[11].mxu0 }
 0x912   :  { %v2130_v20 = vpack.c.bf16 %v2066_v17, %v1044_v19  ;;  %2059 = vmatprep.mubr.msk.f32.mxu1 %vm34_vm1, %v869_v9  ;;  %v1769_v17 = vld [vmem:[%s2450_s5] sm:$0xf] }
 0x913   :  { %2060 = vmatmul.mubr.msk.f32.vlgmr.msra.gmra.mrb[8].mxu1 %vm34_vm1, %v870_v18 }
 0x914   :  { %2131 = vmatprep.subr.bf16.mxu1 %v2130_v20  ;;  %2071 = vmatprep.mubr.msk.f32.mxu1 %vm120_vm2, %v2200_v3 }
 0x915   :  { %2133 = vmatpush3.bf16.msra.mxu1 %v2130_v20 }
 0x916   :  { %2079 = vmatprep.subr.msk.mxu1 %vm41_vm0, %v1912_v39 }
 0x918   :  { %2072 = vmatmul.mubr.msk.f32.vlgmr.msra.gmra.mrb[10].mxu1 %vm120_vm2, %v2207_v7 }
 0x919   :  { %2080 = vmatpush3.msk.msra.mxu1 %vm41_vm0, %v1912_v39 }
 0x91a   :  { %2091 = vmatprep.subr.mxu1 %v2255_v33 }
 0x9e6   :  { %v2061_v22 = vpop.f32.mrb[8].mxu1 }
 0x9e7   :  { %v960_v24 = vadd.f32 %v2061_v22, %v2348_v21  ;;  %v954_v25 = vpop.f32.mrb[9].mxu1 }
 0x9e8   :  { %v955_v26 = vadd.f32 %v2348_v21, %v954_v25 }
 0x9e9   :  { %964 = vst.msk [vmem:[%s2452_s7 + $0x8] sm:$0xff] %vm34_vm1, %v960_v24 }
 0x9ea   :  { %963 = vst.msk [vmem:[%s2452_s7] sm:$0xff] %vm34_vm1, %v955_v26 }
 0x9eb   :  { %v2073_v27 = vpop.f32.mrb[10].mxu1 }
 0x9ec   :  { %v1129_v28 = vrot.slane %v2073_v27, 7  ;;  %v1119_v29 = vpop.f32.mrb[11].mxu1 }
 0x9ed   :  { %v1128_v30 = vrot.slane %v1119_v29, 7 }
 0x9ef   :  { %v1130_v31 = vsel %vm206_vm3, %v1128_v30, %v1129_v28  ;;  %v1131_v32 = vsel %vm206_vm3, %v1129_v28, %v1128_v30 }
 0x9f0   :  { %1138 = vrot.lane.b32.xlu1 %v1130_v31, %s2143_s1  ;;  %v1132_v34 = vsel %vm202_vm4, %v1131_v32, 0.0 }
 0x9f1   :  { %1136 = vrot.lane.b32.xlu0 %v1132_v34, %s2143_s1 }
 0xa62   :  { %v1139_v35 = vpop.permute.xlu1 %1138 }
 0xa63   :  { %v1137_v36 = vpop.permute.xlu0 %1136  ;;  %v1143_v38 = vsel %vm34_vm1, %v2073_v27, %v1139_v35 }
 0xa64   :  { %v1142_v37 = vsel %vm34_vm1, %v1119_v29, %v1137_v36 }
 0xa65   :  { %2076 = vmatprep.mubr.msk.f32.mxu0 %vm233_vm5, %v1142_v37 }
 0xa66   :  { %2077 = vmatmul.mubr.msk.f32.vlgmr.msra.gmra.mrb[12].mxu0 %vm233_vm5, %v1143_v38 }
 0xa67   :  { %2088 = vmatprep.mubr.msk.f32.mxu0 %vm120_vm2, %v2200_v3 }
 0xb39   :  { %v2078_v40 = vpop.f32.mrb[12].mxu0 }
 0xb3a   :  { %v1230_v41 = vadd.f32 %v2078_v40, %v2244_v23  ;;  %v1224_v42 = vpop.f32.mrb[13].mxu0 }
 0xb3b   :  { %v1225_v43 = vadd.f32 %v2244_v23, %v1224_v42 }
 0xb3c   :  { %v1234_v45 = vmax.f32 %v1230_v41, 0.0 }
 0xb3d   :  { %v1233_v44 = vmax.f32 %v1225_v43, 0.0 }
 0xb3f   :  { %2081 = vmatprep.mubr.msk.f32.mxu1 %vm34_vm1, %v1233_v44 }
 0xb40   :  { %2082 = vmatmul.mubr.msk.f32.vlgmr.msra.gmra.mrb[12].mxu1 %vm34_vm1, %v1234_v45 }
 0xb41   :  { %2092 = vmatpush3.msra.mxu1 %v2255_v33 }
 0xc13   :  { %v2083_v47 = vpop.f32.mrb[12].mxu1 }
 0xc14   :  { %v1311_v48 = vpop.f32.mrb[13].mxu1 }
 0xc15   :  { %v2134_v49 = vpack.c.bf16 %v2083_v47, %v1311_v48 }
 0xc17   :  { %2135 = vmatprep.subr.bf16.mxu0 %v2134_v49 }
 0xc18   :  { %2137 = vmatpush3.bf16.msra.mxu0 %v2134_v49 }
 0xc19   :  { %2096 = vmatprep.subr.msk.mxu0 %vm41_vm0, %v1923_v60 }
 0xc1b   :  { %2089 = vmatmul.mubr.msk.f32.vlgmr.msra.gmra.mrb[14].mxu0 %vm120_vm2, %v2207_v7 }
 0xc1c   :  { %2097 = vmatpush3.msk.msra.mxu0 %vm41_vm0, %v1923_v60 }
 0xc1d   :  { %2108 = vmatprep.subr.mxu0 %v2294_v56 }
 0xcee   :  { %v2090_v50 = vpop.f32.mrb[14].mxu0 }
 0xcef   :  { %v1396_v51 = vrot.slane %v2090_v50, 6  ;;  %v1386_v52 = vpop.f32.mrb[15].mxu0 }
 0xcf0   :  { %v1395_v23 = vrot.slane %v1386_v52, 6 }
 0xcf2   :  { %v1397_v53 = vsel %vm482_vm6, %v1395_v23, %v1396_v51  ;;  %v1398_v54 = vsel %vm482_vm6, %v1396_v51, %v1395_v23 }
 0xcf3   :  { %1405 = vrot.lane.b32.xlu1 %v1397_v53, %s2143_s1  ;;  %v1399_v33 = vsel %vm478_vm7, %v1398_v54, 0.0 }
 0xcf4   :  { %1403 = vrot.lane.b32.xlu0 %v1399_v33, %s2143_s1 }
 0xd65   :  { %v1406_v55 = vpop.permute.xlu1 %1405 }
 0xd66   :  { %v1404_v57 = vpop.permute.xlu0 %1403  ;;  %v1410_v59 = vsel %vm34_vm1, %v2090_v50, %v1406_v55 }
 0xd67   :  { %v1409_v58 = vsel %vm34_vm1, %v1386_v52, %v1404_v57 }
 0xd68   :  { %2093 = vmatprep.mubr.msk.f32.mxu1 %vm233_vm5, %v1409_v58 }
 0xd69   :  { %2094 = vmatmul.mubr.msk.f32.vlgmr.msra.gmra.mrb[14].mxu1 %vm233_vm5, %v1410_v59 }
 0xd6a   :  { %2105 = vmatprep.mubr.msk.f32.mxu1 %vm120_vm2, %v2200_v3 }
 0xe3c   :  { %v2095_v61 = vpop.f32.mrb[14].mxu1 }
 0xe3d   :  { %v1497_v62 = vadd.f32 %v2095_v61, %v2283_v46  ;;  %v1491_v63 = vpop.f32.mrb[15].mxu1 }
 0xe3e   :  { %v1492_v0 = vadd.f32 %v2283_v46, %v1491_v63 }
 0xe3f   :  { %v1501_v2 = vmax.f32 %v1497_v62, 0.0 }
 0xe40   :  { %v1500_v1 = vmax.f32 %v1492_v0, 0.0 }
 0xe42   :  { %2098 = vmatprep.mubr.msk.f32.mxu0 %vm34_vm1, %v1500_v1 }
 0xe43   :  { %2099 = vmatmul.mubr.msk.f32.vlgmr.msra.gmra.mrb[16].mxu0 %vm34_vm1, %v1501_v2 }
 0xe44   :  { %2109 = vmatpush3.msra.mxu0 %v2294_v56 }
 0xf16   :  { %v2100_v3 = vpop.f32.mrb[16].mxu0 }
 0xf17   :  { %v1578_v4 = vpop.f32.mrb[17].mxu0 }
 0xf18   :  { %v2138_v5 = vpack.c.bf16 %v2100_v3, %v1578_v4 }
 0xf1a   :  { %2139 = vmatprep.subr.bf16.mxu1 %v2138_v5 }
 0xf1b   :  { %2141 = vmatpush3.bf16.msra.mxu1 %v2138_v5 }
 0xf1c   :  { %2113 = vmatprep.subr.msk.mxu1 %vm41_vm0, %v1769_v17 }
 0xf1e   :  { %2106 = vmatmul.mubr.msk.f32.vlgmr.msra.gmra.mrb[16].mxu1 %vm120_vm2, %v2207_v7 }
 0xf1f   :  { %2114 = vmatpush3.msk.msra.mxu1 %vm41_vm0, %v1769_v17 }
 0xff1   :  { %v2107_v6 = vpop.f32.mrb[16].mxu1 }
 0xff2   :  { %v1663_v8 = vrot.slane %v2107_v6, 4  ;;  %v1653_v11 = vpop.f32.mrb[17].mxu1 }
 0xff3   :  { %v1662_v46 = vrot.slane %v1653_v11, 4 }
 0xff5   :  { %v1664_v13 = vsel %vm759_vm8, %v1662_v46, %v1663_v8  ;;  %v1665_v14 = vsel %vm759_vm8, %v1663_v8, %v1662_v46 }
 0xff6   :  { %1672 = vrot.lane.b32.xlu1 %v1664_v13, %s2143_s1  ;;  %v1666_v56 = vsel %vm755_vm9, %v1665_v14, 0.0 }
 0xff7   :  { %1670 = vrot.lane.b32.xlu0 %v1666_v56, %s2143_s1 }
0x1068   :  { %v1673_v15 = vpop.permute.xlu1 %1672 }
0x1069   :  { %v1671_v16 = vpop.permute.xlu0 %1670  ;;  %v1677_v9 = vsel %vm34_vm1, %v2107_v6, %v1673_v15 }
0x106a   :  { %v1676_v7 = vsel %vm34_vm1, %v1653_v11, %v1671_v16 }
0x106b   :  { %2110 = vmatprep.mubr.msk.f32.mxu0 %vm233_vm5, %v1676_v7 }
0x106c   :  { %2111 = vmatmul.mubr.msk.f32.vlgmr.msra.gmra.mrb[18].mxu0 %vm233_vm5, %v1677_v9 }
0x113f   :  { %v2112_v10 = vpop.f32.mrb[18].mxu0 }
0x1140   :  { %v1764_v18 = vadd.f32 %v2112_v10, %v2335_v12  ;;  %v1758_v19 = vpop.f32.mrb[19].mxu0 }
0x1141   :  { %v1759_v20 = vadd.f32 %v2335_v12, %v1758_v19 }
0x1142   :  { %v1768_v24 = vmax.f32 %v1764_v18, 0.0 }
0x1143   :  { %v1767_v22 = vmax.f32 %v1759_v20, 0.0 }
0x1145   :  { %2115 = vmatprep.mubr.msk.f32.mxu1 %vm34_vm1, %v1767_v22 }
0x1146   :  { %2116 = vmatmul.mubr.msk.f32.vlgmr.msra.gmra.mrb[18].mxu1 %vm34_vm1, %v1768_v24 }
0x1219   :  { %v2117_v25 = vpop.f32.mrb[18].mxu1 }
0x121a   :  { %v1858_v26 = vadd.f32 %v2117_v25, %v2348_v21  ;;  %v1852_v27 = vpop.f32.mrb[19].mxu1 }
0x121b   :  { %v1853_v28 = vadd.f32 %v2348_v21, %v1852_v27 }
0x121c   :  { %1939 = vst.msk [vmem:[%s2452_s7 + $0x18] sm:$0xff] %vm34_vm1, %v1858_v26 }
0x121d   :  { %1938 = vst.msk [vmem:[%s2452_s7 + $0x10] sm:$0xff] %vm34_vm1, %v1853_v28 }

</bundles_post_ra>
